<compile_context>
chip_gen: v7x
topology: tpu7x:2x2x1
jax: 0.10.0
libtpu: 0.0.40
codegen_flags: <defaults>
</compile_context>

<pallas_src>
import math

import jax
import jax.numpy as jnp
import numpy as np
from jax.experimental import pallas as pl
from jax.experimental.pallas import tpu as pltpu

EMBED_DIM = 32                 # embedding_dim
NUM_HEADS = 4
DOWNSAMPLE = 2                 # attention_downsample_rate
INTERNAL_DIM = EMBED_DIM // DOWNSAMPLE   # 16
HEAD_DIM = INTERNAL_DIM // NUM_HEADS     # 4
LN_EPS = 1e-5                  # nn.LayerNorm default

# --- single weight-slab layout: one [SLAB_ROWS, 128] f32 input, one DMA ------
# Every piece starts on an 8-row (sublane-tile) boundary.
ROW_WQ   = 0      # [C, I]  q_proj weight, 1/sqrt(head_dim) pre-folded
ROW_VECS = 32     # rows 32..35: bq(scaled)[I], bo[C], gamma[C], beta[C]
ROW_WKT  = 40     # [I, C]  k_proj weight, pre-transposed
ROW_BKC  = 56     # [I, 1]  k_proj bias as lane-broadcast column
ROW_WVT  = 72     # [I, C]  v_proj weight, pre-transposed
ROW_BVC  = 88     # [I, 1]  v_proj bias as column
ROW_WO   = 104    # [I, C]  out_proj weight
ROW_MASK = 120    # [I, I]  block-diagonal head mask (precomputed)
SLAB_ROWS = 136   # multiple of 8
SLAB_COLS = 128


def _pack_weight_slab(params):
    """Host-side: pack all weights/biases/mask into one lane-aligned slab."""
    C, I = EMBED_DIM, INTERNAL_DIM
    scale = 1.0 / math.sqrt(HEAD_DIM)
    row_h = np.arange(I) // HEAD_DIM
    hmask = (row_h[:, None] == row_h[None, :]).astype(np.float32)   # [I, I]

    slab = jnp.zeros((SLAB_ROWS, SLAB_COLS), jnp.float32)
    slab = slab.at[ROW_WQ:ROW_WQ + C, 0:I].set(params["wq"] * scale)
    slab = slab.at[ROW_VECS + 0, 0:I].set(params["bq"].reshape(-1) * scale)
    slab = slab.at[ROW_VECS + 1, 0:C].set(params["bo"].reshape(-1))
    slab = slab.at[ROW_VECS + 2, 0:C].set(params["gamma"].reshape(-1))
    slab = slab.at[ROW_VECS + 3, 0:C].set(params["beta"].reshape(-1))
    slab = slab.at[ROW_WKT:ROW_WKT + I, 0:C].set(params["wk"].T)
    slab = slab.at[ROW_BKC:ROW_BKC + I, 0].set(params["bk"].reshape(-1))
    slab = slab.at[ROW_WVT:ROW_WVT + I, 0:C].set(params["wv"].T)
    slab = slab.at[ROW_BVC:ROW_BVC + I, 0].set(params["bv"].reshape(-1))
    slab = slab.at[ROW_WO:ROW_WO + I, 0:C].set(params["wo"])
    slab = slab.at[ROW_MASK:ROW_MASK + I, 0:I].set(jnp.asarray(hmask))
    return slab


def _make_kernel(bb: int, hw: int, hw_pad: int, pe_shared: bool):
    """Kernel processing `bb` batch elements per grid step."""
    C, I = EMBED_DIM, INTERNAL_DIM

    def kernel(q_ref, keys_ref, pe_ref, w_ref, out_ref):
        # ---- weight slab: static slices (free); hoisted out of the batch loop
        wq_s = w_ref[ROW_WQ:ROW_WQ + C, 0:I]             # [C, I]  (scale folded)
        vecs = w_ref[ROW_VECS:ROW_VECS + 8, 0:SLAB_COLS]  # aligned 8-row load
        bq_s  = vecs[0:1, 0:I]                            # [1, I]
        bo    = vecs[1:2, 0:C]                            # [1, C]
        gamma = vecs[2:3, 0:C]                            # [1, C]
        beta  = vecs[3:4, 0:C]                            # [1, C]
        wkT = w_ref[ROW_WKT:ROW_WKT + I, 0:C]            # [I, C]
        bkc = w_ref[ROW_BKC:ROW_BKC + I, 0:1]            # [I, 1]
        wvT = w_ref[ROW_WVT:ROW_WVT + I, 0:C]            # [I, C]
        bvc = w_ref[ROW_BVC:ROW_BVC + I, 0:1]            # [I, 1]
        wo  = w_ref[ROW_WO:ROW_WO + I, 0:C]              # [I, C]
        hmask = w_ref[ROW_MASK:ROW_MASK + I, 0:I]        # [I, I] 0/1

        if hw_pad != hw:
            lane = jax.lax.broadcasted_iota(jnp.int32, (I, hw_pad), 1)
            valid = lane < hw                             # hoisted pad mask

        if pe_shared:
            pe0 = pe_ref[0]                               # DMA'd once for all b

        for b in range(bb):                               # short static loop
            queries = q_ref[b]                            # [Nq, C]
            keys_cn = keys_ref[b]                         # [C, HWp] lane-dense
            pe_cn = pe0 if pe_shared else pe_ref[b]
            k_in = keys_cn + pe_cn

            # depth==0: queries == point_embedding -> q = queries + query_pe
            q_in = queries + queries                      # [Nq, C]

            # Q projection (scale pre-folded into wq_s / bq_s).
            qp = jnp.dot(q_in, wq_s,
                         preferred_element_type=jnp.float32) + bq_s   # [Nq, I]

            # K/V projections in channel-major form: no in-kernel transposes.
            kpT = jnp.dot(wkT, k_in,
                          preferred_element_type=jnp.float32) + bkc   # [I, HWp]
            vpT = jnp.dot(wvT, keys_cn,
                          preferred_element_type=jnp.float32) + bvc   # [I, HWp]
            if hw_pad != hw:
                # keys/pe pad lanes are zero; only the bias pollutes them.
                # Zeroing one factor of K^T V makes the pad contribution exact 0.
                vpT = jnp.where(valid, vpT, 0.0)

            # KV = Kp^T @ Vp, contracting the HW lane axis of both operands.
            kv = jax.lax.dot_general(kpT, vpT, (((1,), (1,)), ((), ())),
                                     preferred_element_type=jnp.float32)  # [I,I]
            kv = kv * hmask            # precomputed block-diagonal head mask

            # (Qp/sqrt(d)) @ KV == concat_h[(Qh Kh^T / sqrt(d)) Vh]  (no softmax)
            attn_out = jnp.dot(qp, kv,
                               preferred_element_type=jnp.float32)    # [Nq, I]
            proj = jnp.dot(attn_out, wo,
                           preferred_element_type=jnp.float32) + bo   # [Nq, C]

            # residual + LayerNorm(embedding_dim)
            x = queries + proj
            mean = jnp.mean(x, axis=-1, keepdims=True)
            var = jnp.mean((x - mean) ** 2, axis=-1, keepdims=True)
            xn = (x - mean) * jax.lax.rsqrt(var + LN_EPS)
            out_ref[b] = xn * gamma + beta

    return kernel


def two_way_attention_block(image_embedding, image_pe, point_embedding, params,
                            *, batch_block=None):
    """Forward pass.  Returns (queries, keys) exactly like the PyTorch module."""
    B, C, H, W = image_embedding.shape
    assert C == EMBED_DIM
    HW = H * W
    Nq = point_embedding.shape[1]

    # Batch blocking: BB batches per grid step.  Default BB=B (grid=(1,)) is
    # best for single-TC v5e/v6e at small B; on v7x pass batch_block=B//2 so
    # both TensorCores get a "parallel" step.
    if batch_block is None:
        batch_block = B
    assert B % batch_block == 0, "batch_block must divide B"
    n_steps = B // batch_block

    # image_pe may be batch-broadcast (SAM): if so, DMA it once.
    pe_B = image_pe.shape[0]
    assert pe_B in (1, B)
    pe_shared = (pe_B == 1)

    # Lane-dense spatial axis: pad HW up to a multiple of 128 (real SAM
    # resolutions already satisfy HW % 128 == 0 and take the no-pad path).
    HWp = max(128, ((HW + 127) // 128) * 128)
    keys_cn = image_embedding.reshape(B, C, HW)          # [B, C, HW] chan-major
    pe_cn = image_pe.reshape(pe_B, C, HW)
    if HWp != HW:
        pad = ((0, 0), (0, 0), (0, HWp - HW))
        keys_cn_p = jnp.pad(keys_cn, pad)
        pe_cn_p = jnp.pad(pe_cn, pad)
    else:
        keys_cn_p, pe_cn_p = keys_cn, pe_cn

    slab = _pack_weight_slab(params)                     # one DMA for all weights
    kernel = _make_kernel(batch_block, HW, HWp, pe_shared)

    pe_spec = (pl.BlockSpec((1, C, HWp), lambda g: (0, 0, 0)) if pe_shared
               else pl.BlockSpec((batch_block, C, HWp), lambda g: (g, 0, 0)))

    q_out = pl.pallas_call(
        kernel,
        out_shape=jax.ShapeDtypeStruct((B, Nq, C), jnp.float32),
        grid=(n_steps,),
        in_specs=[
            pl.BlockSpec((batch_block, Nq, C), lambda g: (g, 0, 0)),   # queries
            pl.BlockSpec((batch_block, C, HWp), lambda g: (g, 0, 0)),  # keys
            pe_spec,                                                   # image_pe
            pl.BlockSpec((SLAB_ROWS, SLAB_COLS), lambda g: (0, 0)),    # weights
        ],
        out_specs=pl.BlockSpec((batch_block, Nq, C), lambda g: (g, 0, 0)),
        # "parallel": shards batch steps across TCs on v7x; measured no-op on
        # single-TC v5e/v6e.  (pl.Buffered(3) only pays off once n_steps >> 2.)
        compiler_params=pltpu.CompilerParams(dimension_semantics=("parallel",)),
    )(point_embedding, keys_cn_p, pe_cn_p, slab)

    # Module contract: keys returned token-major [B, HW, C].  At real SAM
    # sizes this transpose moves more HBM bytes than the kernel itself --
    # drop it if the consumer can take channel-major keys.
    keys_out = keys_cn.transpose(0, 2, 1)
    return q_out, keys_out


def reference_forward(image_embedding, image_pe, point_embedding, params):
    """Pure-JAX mirror of the PyTorch forward (for correctness check)."""
    B, C, H, W = image_embedding.shape
    keys = image_embedding.reshape(B, C, H * W).transpose(0, 2, 1)
    pe = image_pe.reshape(image_pe.shape[0], C, H * W).transpose(0, 2, 1)
    queries = point_embedding
    q = queries + point_embedding
    k = keys + pe
    qp = q @ params["wq"] + params["bq"][0]
    kp = k @ params["wk"] + params["bk"][0]
    vp = keys @ params["wv"] + params["bv"][0]

    def sep(x):
        b, n, c = x.shape
        return x.reshape(b, n, NUM_HEADS, c // NUM_HEADS).transpose(0, 2, 1, 3)

    qh, kh, vh = sep(qp), sep(kp), sep(vp)
    attn = (qh @ kh.transpose(0, 1, 3, 2)) / math.sqrt(HEAD_DIM)   # no softmax
    out = attn @ vh
    out = out.transpose(0, 2, 1, 3).reshape(B, -1, INTERNAL_DIM)
    out = out @ params["wo"] + params["bo"][0]
    x = queries + out
    mean = x.mean(-1, keepdims=True)
    var = ((x - mean) ** 2).mean(-1, keepdims=True)
    xn = (x - mean) / jnp.sqrt(var + LN_EPS)
    return xn * params["gamma"][0] + params["beta"][0], keys


def make_params(key):
    ks = jax.random.split(key, 10)
    s = 0.05
    return {
        "wq": s * jax.random.normal(ks[0], (EMBED_DIM, INTERNAL_DIM), jnp.float32),
        "bq": s * jax.random.normal(ks[1], (1, INTERNAL_DIM), jnp.float32),
        "wk": s * jax.random.normal(ks[2], (EMBED_DIM, INTERNAL_DIM), jnp.float32),
        "bk": s * jax.random.normal(ks[3], (1, INTERNAL_DIM), jnp.float32),
        "wv": s * jax.random.normal(ks[4], (EMBED_DIM, INTERNAL_DIM), jnp.float32),
        "bv": s * jax.random.normal(ks[5], (1, INTERNAL_DIM), jnp.float32),
        "wo": s * jax.random.normal(ks[6], (INTERNAL_DIM, EMBED_DIM), jnp.float32),
        "bo": s * jax.random.normal(ks[7], (1, EMBED_DIM), jnp.float32),
        "gamma": 1.0 + 0.1 * jax.random.normal(ks[8], (1, EMBED_DIM), jnp.float32),
        "beta": 0.1 * jax.random.normal(ks[9], (1, EMBED_DIM), jnp.float32),
    }


if __name__ == "__main__":
    key = jax.random.PRNGKey(0)
    k_img, k_pe, k_pt, k_par = jax.random.split(key, 4)

    B, C, H, W, Nq = 2, EMBED_DIM, 8, 8, 8
    image_embedding = jax.random.normal(k_img, (B, C, H, W), jnp.float32)
    image_pe = jax.random.normal(k_pe, (B, C, H, W), jnp.float32)
    point_embedding = jax.random.normal(k_pt, (B, Nq, C), jnp.float32)
    params = make_params(k_par)

    # Default batch_block=B -> single grid step (feedback: best for v5e/v6e at
    # B=2; on v7x pass batch_block=B//2 to feed both TensorCores).
    queries_out, keys_out = two_way_attention_block(
        image_embedding, image_pe, point_embedding, params)
    jax.block_until_ready(queries_out)
    jax.block_until_ready(keys_out)

    ref_q, ref_k = reference_forward(image_embedding, image_pe, point_embedding,
                                     params)
    # (Q K^T) V -> Q (K^T V) reassociation changes fp32 rounding order slightly.
    np.testing.assert_allclose(np.asarray(queries_out), np.asarray(ref_q),
                               rtol=2e-5, atol=2e-5)
    np.testing.assert_allclose(np.asarray(keys_out), np.asarray(ref_k),
                               rtol=1e-6, atol=1e-6)
    print("KERNEL_OK")
</pallas_src>

<mosaic_0001>
module attributes {stable_mosaic.version = 11 : i64} {
  func.func @kernel(%arg0: i32, %arg1: memref<2x8x32xf32, #tpu.memory_space<vmem>>, %arg2: memref<2x32x128xf32, #tpu.memory_space<vmem>>, %arg3: memref<2x32x128xf32, #tpu.memory_space<vmem>>, %arg4: memref<136x128xf32, #tpu.memory_space<vmem>>, %arg5: memref<2x8x32xf32, #tpu.memory_space<vmem>>) attributes {dimension_semantics = [#tpu.dimension_semantics<parallel>], iteration_bounds = array<i64: 1>, scalar_prefetch = 0 : i64, scratch_operands = 0 : i64, tpu.core_type = #tpu.core_type<tc>, window_params = [{transform_indices = @transform_0, window_bounds = array<i64: 2, 8, 32>}, {transform_indices = @transform_1, window_bounds = array<i64: 2, 32, 128>}, {transform_indices = @transform_2, window_bounds = array<i64: 2, 32, 128>}, {pipeline_mode = #tpu.pipeline_mode<synchronous>, transform_indices = @transform_3, window_bounds = array<i64: 136, 128>}, {transform_indices = @transform_4, window_bounds = array<i64: 2, 8, 32>}]} {
    %c0 = arith.constant 0 : index
    %c0_0 = arith.constant 0 : index
    %0 = vector.load %arg4[%c0, %c0_0] : memref<136x128xf32, #tpu.memory_space<vmem>>, vector<32x16xf32>
    %c32 = arith.constant 32 : index
    %c0_1 = arith.constant 0 : index
    %1 = vector.load %arg4[%c32, %c0_1] : memref<136x128xf32, #tpu.memory_space<vmem>>, vector<8x128xf32>
    %2 = vector.extract_strided_slice %1 {offsets = [0, 0], sizes = [1, 16], strides = [1, 1]} : vector<8x128xf32> to vector<1x16xf32>
    %3 = vector.extract_strided_slice %1 {offsets = [1, 0], sizes = [1, 32], strides = [1, 1]} : vector<8x128xf32> to vector<1x32xf32>
    %4 = vector.extract_strided_slice %1 {offsets = [2, 0], sizes = [1, 32], strides = [1, 1]} : vector<8x128xf32> to vector<1x32xf32>
    %5 = vector.extract_strided_slice %1 {offsets = [3, 0], sizes = [1, 32], strides = [1, 1]} : vector<8x128xf32> to vector<1x32xf32>
    %c40 = arith.constant 40 : index
    %c0_2 = arith.constant 0 : index
    %6 = vector.load %arg4[%c40, %c0_2] : memref<136x128xf32, #tpu.memory_space<vmem>>, vector<16x32xf32>
    %c56 = arith.constant 56 : index
    %c0_3 = arith.constant 0 : index
    %7 = vector.load %arg4[%c56, %c0_3] : memref<136x128xf32, #tpu.memory_space<vmem>>, vector<16x1xf32>
    %c72 = arith.constant 72 : index
    %c0_4 = arith.constant 0 : index
    %8 = vector.load %arg4[%c72, %c0_4] : memref<136x128xf32, #tpu.memory_space<vmem>>, vector<16x32xf32>
    %c88 = arith.constant 88 : index
    %c0_5 = arith.constant 0 : index
    %9 = vector.load %arg4[%c88, %c0_5] : memref<136x128xf32, #tpu.memory_space<vmem>>, vector<16x1xf32>
    %c104 = arith.constant 104 : index
    %c0_6 = arith.constant 0 : index
    %10 = vector.load %arg4[%c104, %c0_6] : memref<136x128xf32, #tpu.memory_space<vmem>>, vector<16x32xf32>
    %c120 = arith.constant 120 : index
    %c0_7 = arith.constant 0 : index
    %11 = vector.load %arg4[%c120, %c0_7] : memref<136x128xf32, #tpu.memory_space<vmem>>, vector<16x16xf32>
    %12 = tpu.iota {dimensions = array<i32: 1>} : vector<16x128xi32>
    %c64_i32 = arith.constant 64 : i32
    %13 = vector.broadcast %c64_i32 : i32 to vector<16x128xi32>
    %14 = arith.cmpi slt, %12, %13 : vector<16x128xi32>
    %c0_8 = arith.constant 0 : index
    %c0_9 = arith.constant 0 : index
    %c0_10 = arith.constant 0 : index
    %15 = vector.load %arg1[%c0_8, %c0_9, %c0_10] : memref<2x8x32xf32, #tpu.memory_space<vmem>>, vector<1x8x32xf32>
    %16 = vector.shape_cast %15 : vector<1x8x32xf32> to vector<8x32xf32>
    %c0_11 = arith.constant 0 : index
    %c0_12 = arith.constant 0 : index
    %c0_13 = arith.constant 0 : index
    %17 = vector.load %arg2[%c0_11, %c0_12, %c0_13] : memref<2x32x128xf32, #tpu.memory_space<vmem>>, vector<1x32x128xf32>
    %18 = vector.shape_cast %17 : vector<1x32x128xf32> to vector<32x128xf32>
    %c0_14 = arith.constant 0 : index
    %c0_15 = arith.constant 0 : index
    %c0_16 = arith.constant 0 : index
    %19 = vector.load %arg3[%c0_14, %c0_15, %c0_16] : memref<2x32x128xf32, #tpu.memory_space<vmem>>, vector<1x32x128xf32>
    %20 = vector.shape_cast %19 : vector<1x32x128xf32> to vector<32x128xf32>
    %21 = arith.addf %18, %20 : vector<32x128xf32>
    %22 = arith.addf %16, %16 : vector<8x32xf32>
    %cst = arith.constant dense<0.000000e+00> : vector<8x16xf32>
    %23 = tpu.matmul %22, %0, %cst {dimension_numbers = #tpu.dot_dimension_numbers<[1], [0], [0], [1], [0, 0, 1, 1], [], []>} : vector<8x32xf32>, vector<32x16xf32>, vector<8x16xf32> -> vector<8x16xf32>
    %24 = vector.broadcast %2 : vector<1x16xf32> to vector<8x16xf32>
    %25 = arith.addf %23, %24 : vector<8x16xf32>
    %cst_17 = arith.constant dense<0.000000e+00> : vector<16x128xf32>
    %26 = tpu.matmul %6, %21, %cst_17 {dimension_numbers = #tpu.dot_dimension_numbers<[1], [0], [0], [1], [0, 0, 1, 1], [], []>} : vector<16x32xf32>, vector<32x128xf32>, vector<16x128xf32> -> vector<16x128xf32>
    %27 = vector.broadcast %7 : vector<16x1xf32> to vector<16x128xf32>
    %28 = arith.addf %26, %27 : vector<16x128xf32>
    %cst_18 = arith.constant dense<0.000000e+00> : vector<16x128xf32>
    %29 = tpu.matmul %8, %18, %cst_18 {dimension_numbers = #tpu.dot_dimension_numbers<[1], [0], [0], [1], [0, 0, 1, 1], [], []>} : vector<16x32xf32>, vector<32x128xf32>, vector<16x128xf32> -> vector<16x128xf32>
    %30 = vector.broadcast %9 : vector<16x1xf32> to vector<16x128xf32>
    %31 = arith.addf %29, %30 : vector<16x128xf32>
    %cst_19 = arith.constant 0.000000e+00 : f32
    %32 = vector.broadcast %cst_19 : f32 to vector<16x128xf32>
    %33 = arith.select %14, %31, %32 : vector<16x128xi1>, vector<16x128xf32>
    %cst_20 = arith.constant dense<0.000000e+00> : vector<16x16xf32>
    %34 = tpu.matmul %28, %33, %cst_20 {dimension_numbers = #tpu.dot_dimension_numbers<[1], [1], [0], [0], [0, 0, 1, 0], [], []>} : vector<16x128xf32>, vector<16x128xf32>, vector<16x16xf32> -> vector<16x16xf32>
    %35 = arith.mulf %34, %11 : vector<16x16xf32>
    %cst_21 = arith.constant dense<0.000000e+00> : vector<8x16xf32>
    %36 = tpu.matmul %25, %35, %cst_21 {dimension_numbers = #tpu.dot_dimension_numbers<[1], [0], [0], [1], [0, 0, 1, 1], [], []>} : vector<8x16xf32>, vector<16x16xf32>, vector<8x16xf32> -> vector<8x16xf32>
    %cst_22 = arith.constant dense<0.000000e+00> : vector<8x32xf32>
    %37 = tpu.matmul %36, %10, %cst_22 {dimension_numbers = #tpu.dot_dimension_numbers<[1], [0], [0], [1], [0, 0, 1, 1], [], []>} : vector<8x16xf32>, vector<16x32xf32>, vector<8x32xf32> -> vector<8x32xf32>
    %38 = vector.broadcast %3 : vector<1x32xf32> to vector<8x32xf32>
    %39 = arith.addf %37, %38 : vector<8x32xf32>
    %40 = arith.addf %16, %39 : vector<8x32xf32>
    %cst_23 = arith.constant dense<0.000000e+00> : vector<8xf32>
    %41 = vector.multi_reduction <add>, %40, %cst_23 [1] : vector<8x32xf32> to vector<8xf32>
    %42 = vector.shape_cast %41 : vector<8xf32> to vector<8x1xf32>
    %cst_24 = arith.constant 3.200000e+01 : f32
    %43 = vector.broadcast %cst_24 : f32 to vector<8x1xf32>
    %44 = arith.divf %42, %43 : vector<8x1xf32>
    %45 = vector.broadcast %44 : vector<8x1xf32> to vector<8x32xf32>
    %46 = arith.subf %40, %45 : vector<8x32xf32>
    %47 = arith.mulf %46, %46 : vector<8x32xf32>
    %cst_25 = arith.constant dense<0.000000e+00> : vector<8xf32>
    %48 = vector.multi_reduction <add>, %47, %cst_25 [1] : vector<8x32xf32> to vector<8xf32>
    %49 = vector.shape_cast %48 : vector<8xf32> to vector<8x1xf32>
    %cst_26 = arith.constant 3.200000e+01 : f32
    %50 = vector.broadcast %cst_26 : f32 to vector<8x1xf32>
    %51 = arith.divf %49, %50 : vector<8x1xf32>
    %52 = vector.broadcast %44 : vector<8x1xf32> to vector<8x32xf32>
    %53 = arith.subf %40, %52 : vector<8x32xf32>
    %cst_27 = arith.constant 9.99999974E-6 : f32
    %54 = vector.broadcast %cst_27 : f32 to vector<8x1xf32>
    %55 = arith.addf %51, %54 : vector<8x1xf32>
    %56 = math.rsqrt %55 : vector<8x1xf32>
    %57 = vector.broadcast %56 : vector<8x1xf32> to vector<8x32xf32>
    %58 = arith.mulf %53, %57 : vector<8x32xf32>
    %59 = vector.broadcast %4 : vector<1x32xf32> to vector<8x32xf32>
    %60 = arith.mulf %58, %59 : vector<8x32xf32>
    %61 = vector.broadcast %5 : vector<1x32xf32> to vector<8x32xf32>
    %62 = arith.addf %60, %61 : vector<8x32xf32>
    %c0_28 = arith.constant 0 : index
    %c0_29 = arith.constant 0 : index
    %c0_30 = arith.constant 0 : index
    %63 = vector.load %arg5[%c0_28, %c0_29, %c0_30] : memref<2x8x32xf32, #tpu.memory_space<vmem>>, vector<1x8x32xf32>
    %64 = vector.shape_cast %63 : vector<1x8x32xf32> to vector<8x32xf32>
    %65 = vector.shape_cast %62 : vector<8x32xf32> to vector<1x8x32xf32>
    tpu.vector_store %arg5[%c0_28, %c0_29, %c0_30], %65 {strides = array<i32>} : memref<2x8x32xf32, #tpu.memory_space<vmem>>, vector<1x8x32xf32>,
    %c1 = arith.constant 1 : index
    %c0_31 = arith.constant 0 : index
    %c0_32 = arith.constant 0 : index
    %66 = vector.load %arg1[%c1, %c0_31, %c0_32] : memref<2x8x32xf32, #tpu.memory_space<vmem>>, vector<1x8x32xf32>
    %67 = vector.shape_cast %66 : vector<1x8x32xf32> to vector<8x32xf32>
    %c1_33 = arith.constant 1 : index
    %c0_34 = arith.constant 0 : index
    %c0_35 = arith.constant 0 : index
    %68 = vector.load %arg2[%c1_33, %c0_34, %c0_35] : memref<2x32x128xf32, #tpu.memory_space<vmem>>, vector<1x32x128xf32>
    %69 = vector.shape_cast %68 : vector<1x32x128xf32> to vector<32x128xf32>
    %c1_36 = arith.constant 1 : index
    %c0_37 = arith.constant 0 : index
    %c0_38 = arith.constant 0 : index
    %70 = vector.load %arg3[%c1_36, %c0_37, %c0_38] : memref<2x32x128xf32, #tpu.memory_space<vmem>>, vector<1x32x128xf32>
    %71 = vector.shape_cast %70 : vector<1x32x128xf32> to vector<32x128xf32>
    %72 = arith.addf %69, %71 : vector<32x128xf32>
    %73 = arith.addf %67, %67 : vector<8x32xf32>
    %cst_39 = arith.constant dense<0.000000e+00> : vector<8x16xf32>
    %74 = tpu.matmul %73, %0, %cst_39 {dimension_numbers = #tpu.dot_dimension_numbers<[1], [0], [0], [1], [0, 0, 1, 1], [], []>} : vector<8x32xf32>, vector<32x16xf32>, vector<8x16xf32> -> vector<8x16xf32>
    %75 = vector.broadcast %2 : vector<1x16xf32> to vector<8x16xf32>
    %76 = arith.addf %74, %75 : vector<8x16xf32>
    %cst_40 = arith.constant dense<0.000000e+00> : vector<16x128xf32>
    %77 = tpu.matmul %6, %72, %cst_40 {dimension_numbers = #tpu.dot_dimension_numbers<[1], [0], [0], [1], [0, 0, 1, 1], [], []>} : vector<16x32xf32>, vector<32x128xf32>, vector<16x128xf32> -> vector<16x128xf32>
    %78 = vector.broadcast %7 : vector<16x1xf32> to vector<16x128xf32>
    %79 = arith.addf %77, %78 : vector<16x128xf32>
    %cst_41 = arith.constant dense<0.000000e+00> : vector<16x128xf32>
    %80 = tpu.matmul %8, %69, %cst_41 {dimension_numbers = #tpu.dot_dimension_numbers<[1], [0], [0], [1], [0, 0, 1, 1], [], []>} : vector<16x32xf32>, vector<32x128xf32>, vector<16x128xf32> -> vector<16x128xf32>
    %81 = vector.broadcast %9 : vector<16x1xf32> to vector<16x128xf32>
    %82 = arith.addf %80, %81 : vector<16x128xf32>
    %cst_42 = arith.constant 0.000000e+00 : f32
    %83 = vector.broadcast %cst_42 : f32 to vector<16x128xf32>
    %84 = arith.select %14, %82, %83 : vector<16x128xi1>, vector<16x128xf32>
    %cst_43 = arith.constant dense<0.000000e+00> : vector<16x16xf32>
    %85 = tpu.matmul %79, %84, %cst_43 {dimension_numbers = #tpu.dot_dimension_numbers<[1], [1], [0], [0], [0, 0, 1, 0], [], []>} : vector<16x128xf32>, vector<16x128xf32>, vector<16x16xf32> -> vector<16x16xf32>
    %86 = arith.mulf %85, %11 : vector<16x16xf32>
    %cst_44 = arith.constant dense<0.000000e+00> : vector<8x16xf32>
    %87 = tpu.matmul %76, %86, %cst_44 {dimension_numbers = #tpu.dot_dimension_numbers<[1], [0], [0], [1], [0, 0, 1, 1], [], []>} : vector<8x16xf32>, vector<16x16xf32>, vector<8x16xf32> -> vector<8x16xf32>
    %cst_45 = arith.constant dense<0.000000e+00> : vector<8x32xf32>
    %88 = tpu.matmul %87, %10, %cst_45 {dimension_numbers = #tpu.dot_dimension_numbers<[1], [0], [0], [1], [0, 0, 1, 1], [], []>} : vector<8x16xf32>, vector<16x32xf32>, vector<8x32xf32> -> vector<8x32xf32>
    %89 = vector.broadcast %3 : vector<1x32xf32> to vector<8x32xf32>
    %90 = arith.addf %88, %89 : vector<8x32xf32>
    %91 = arith.addf %67, %90 : vector<8x32xf32>
    %cst_46 = arith.constant dense<0.000000e+00> : vector<8xf32>
    %92 = vector.multi_reduction <add>, %91, %cst_46 [1] : vector<8x32xf32> to vector<8xf32>
    %93 = vector.shape_cast %92 : vector<8xf32> to vector<8x1xf32>
    %cst_47 = arith.constant 3.200000e+01 : f32
    %94 = vector.broadcast %cst_47 : f32 to vector<8x1xf32>
    %95 = arith.divf %93, %94 : vector<8x1xf32>
    %96 = vector.broadcast %95 : vector<8x1xf32> to vector<8x32xf32>
    %97 = arith.subf %91, %96 : vector<8x32xf32>
    %98 = arith.mulf %97, %97 : vector<8x32xf32>
    %cst_48 = arith.constant dense<0.000000e+00> : vector<8xf32>
    %99 = vector.multi_reduction <add>, %98, %cst_48 [1] : vector<8x32xf32> to vector<8xf32>
    %100 = vector.shape_cast %99 : vector<8xf32> to vector<8x1xf32>
    %cst_49 = arith.constant 3.200000e+01 : f32
    %101 = vector.broadcast %cst_49 : f32 to vector<8x1xf32>
    %102 = arith.divf %100, %101 : vector<8x1xf32>
    %103 = vector.broadcast %95 : vector<8x1xf32> to vector<8x32xf32>
    %104 = arith.subf %91, %103 : vector<8x32xf32>
    %cst_50 = arith.constant 9.99999974E-6 : f32
    %105 = vector.broadcast %cst_50 : f32 to vector<8x1xf32>
    %106 = arith.addf %102, %105 : vector<8x1xf32>
    %107 = math.rsqrt %106 : vector<8x1xf32>
    %108 = vector.broadcast %107 : vector<8x1xf32> to vector<8x32xf32>
    %109 = arith.mulf %104, %108 : vector<8x32xf32>
    %110 = vector.broadcast %4 : vector<1x32xf32> to vector<8x32xf32>
    %111 = arith.mulf %109, %110 : vector<8x32xf32>
    %112 = vector.broadcast %5 : vector<1x32xf32> to vector<8x32xf32>
    %113 = arith.addf %111, %112 : vector<8x32xf32>
    %c1_51 = arith.constant 1 : index
    %c0_52 = arith.constant 0 : index
    %c0_53 = arith.constant 0 : index
    %114 = vector.load %arg5[%c1_51, %c0_52, %c0_53] : memref<2x8x32xf32, #tpu.memory_space<vmem>>, vector<1x8x32xf32>
    %115 = vector.shape_cast %114 : vector<1x8x32xf32> to vector<8x32xf32>
    %116 = vector.shape_cast %113 : vector<8x32xf32> to vector<1x8x32xf32>
    tpu.vector_store %arg5[%c1_51, %c0_52, %c0_53], %116 {strides = array<i32>} : memref<2x8x32xf32, #tpu.memory_space<vmem>>, vector<1x8x32xf32>,
    return
  }
  func.func @transform_0(%arg0: i32) -> (i32, i32, i32) {
    %c0_i32 = arith.constant 0 : i32
    %c0_i32_0 = arith.constant 0 : i32
    %c0_i32_1 = arith.constant 0 : i32
    return %arg0, %c0_i32, %c0_i32_0 : i32, i32, i32
  }
  func.func @transform_1(%arg0: i32) -> (i32, i32, i32) {
    %c0_i32 = arith.constant 0 : i32
    %c0_i32_0 = arith.constant 0 : i32
    %c0_i32_1 = arith.constant 0 : i32
    return %arg0, %c0_i32, %c0_i32_0 : i32, i32, i32
  }
  func.func @transform_2(%arg0: i32) -> (i32, i32, i32) {
    %c0_i32 = arith.constant 0 : i32
    %c0_i32_0 = arith.constant 0 : i32
    %c0_i32_1 = arith.constant 0 : i32
    return %arg0, %c0_i32, %c0_i32_0 : i32, i32, i32
  }
  func.func @transform_3(%arg0: i32) -> (i32, i32) {
    %c0_i32 = arith.constant 0 : i32
    %c0_i32_0 = arith.constant 0 : i32
    %c0_i32_1 = arith.constant 0 : i32
    return %c0_i32, %c0_i32_0 : i32, i32
  }
  func.func @transform_4(%arg0: i32) -> (i32, i32, i32) {
    %c0_i32 = arith.constant 0 : i32
    %c0_i32_0 = arith.constant 0 : i32
    %c0_i32_1 = arith.constant 0 : i32
    return %arg0, %c0_i32, %c0_i32_0 : i32, i32, i32
  }
}

</mosaic_0001>

<bundles_post_ra>
// kernel: tpu_custom_call.1
= control target key start
LH: loop header
LB: loop body
LE: loop exit
PB: predicated region body
PF: predicated region fallthrough
CT: control target
= control target key end

     0   :  { %9 = vsyncpa [#allocation3], 0  ;;  %s1763_s0 = inlined_call_operand.hbm [shape: f32[2,8,32], index: 0, kind: input, shape index: {}]   ;;  %s1764_s1 = inlined_call_operand.hbm [shape: f32[2,32,128], index: 1, kind: input, shape index: {}]   ;;  %s1765_s2 = inlined_call_operand.hbm [shape: f32[2,32,128], index: 2, kind: input, shape index: {}]   ;;  %s1766_s3 = inlined_call_operand.hbm [shape: f32[136,128], index: 3, kind: input, shape index: {}]   ;;  %s1767_s4 = inlined_call_operand.hbm [shape: f32[2,8,32], index: 4, kind: output, shape index: {}]  }
   0x1   :  { %10 = vsyncpa [#allocation6], 0 }
   0x2   :  { %11 = vsyncpa [#allocation9], 0 }
   0x3   :  { %12 = vsyncpa [#allocation4], 0  ;;  %s1508_s15 = smov [#allocation5]   ;;  %s1509_s17 = smov [#allocation2]  }
   0x4   :  { %s30_s16 = sshll.u32 %s1508_s15, 4  ;;  %s18_s18 = sshll.u32 %s1509_s17, 4  ;;  %s31_s16 = int_to_ptr.vmem [resolvable:$true] %s30_s16  ;;  %s1544_s18 = int_to_ptr.vmem [resolvable:$true] %s18_s18 }
   0x5   :  { %s1390_s21 = scalar_lea.hbm %s1764_s1, 1024 }
   0x6   :  { %p1391_p0 = scmp.ne.s32.totalorder %s1764_s1, %s1390_s21  ;;  %p1394_p1 = scmp.lt.u32.totalorder %s1390_s21, %s1764_s1 }
   0x8   :  { %p1396_p2 = pnand %p1394_p1, %p1391_p0 }
   0xa   :  { %1399 = shalt.err (!%p1396_p2)
}
   0xb   :  { %s1400_s26 = scalar_lea.vmem %s31_s16, 1024  ;;  %p1405_p4 = scmp.lt.s32.totalorder %s31_s16, %s31_s16 }
   0xc   :  { %p1401_p3 = scmp.ne.s32.totalorder %s31_s16, %s1400_s26  ;;  %p1406_p5 = scmp.lt.s32.totalorder %s1400_s26, %s1400_s26 }
   0xe   :  { %p1407_p6 = por %p1406_p5, %p1405_p4 }
  0x10   :  { %p1408_p7 = pnand %p1407_p6, %p1401_p3 }
  0x12   :  { %1411 = shalt.err (!%p1408_p7)
}
  0x13   :  { %s1510_s27 = smov 128   ;;  %s1511_s28 = smov 8  }
  0x14   :  { %36 = dma.hbm_to_vmem [thread:$0]  %s1764_s1, 1024, %s31_s16, [#allocation6], %s1510_s27, %s1510_s27, %s1511_s28  }
  0x15   :  { %s1412_s7 = scalar_lea.hbm %s1763_s0, 256 }
  0x16   :  { %p1413_p8 = scmp.ne.s32.totalorder %s1763_s0, %s1412_s7  ;;  %p1416_p9 = scmp.lt.u32.totalorder %s1412_s7, %s1763_s0 }
  0x18   :  { %p1418_p10 = pnand %p1416_p9, %p1413_p8 }
  0x1a   :  { %1421 = shalt.err (!%p1418_p10)
}
  0x1b   :  { %s1422_s12 = scalar_lea.vmem %s1544_s18, 256  ;;  %p1427_p12 = scmp.lt.s32.totalorder %s1544_s18, %s1544_s18 }
  0x1c   :  { %p1423_p11 = scmp.ne.s32.totalorder %s1544_s18, %s1422_s12  ;;  %p1428_p13 = scmp.lt.s32.totalorder %s1422_s12, %s1422_s12 }
  0x1e   :  { %p1429_p0 = por %p1428_p13, %p1427_p12 }
  0x20   :  { %p1430_p1 = pnand %p1429_p0, %p1423_p11 }
  0x22   :  { %1433 = shalt.err (!%p1430_p1)
}
  0x23   :  { %24 = dma.hbm_to_vmem [thread:$0]  %s1763_s0, 256, %s1544_s18, [#allocation3], %s1510_s27, %s1510_s27, %s1511_s28  }
  0x24   :  { %s1512_s14 = smov [#allocation7]   ;;  %s1513_s16 = smov [#allocation8]  }
  0x25   :  { %s42_s15 = sshll.u32 %s1512_s14, 4  ;;  %s54_s17 = sshll.u32 %s1513_s16, 4  ;;  %s43_s15 = int_to_ptr.vmem [resolvable:$true] %s42_s15  ;;  %s1581_s17 = int_to_ptr.vmem [resolvable:$true] %s54_s17 }
  0x26   :  { %s1434_s21 = scalar_lea.hbm %s1765_s2, 1024 }
  0x27   :  { %p1435_p2 = scmp.ne.s32.totalorder %s1765_s2, %s1434_s21  ;;  %p1438_p3 = scmp.lt.u32.totalorder %s1434_s21, %s1765_s2 }
  0x29   :  { %p1440_p4 = pnand %p1438_p3, %p1435_p2 }
  0x2b   :  { %1443 = shalt.err (!%p1440_p4)
}
  0x2c   :  { %s1444_s0 = scalar_lea.vmem %s43_s15, 1024  ;;  %p1449_p6 = scmp.lt.s32.totalorder %s43_s15, %s43_s15 }
  0x2d   :  { %p1445_p5 = scmp.ne.s32.totalorder %s43_s15, %s1444_s0  ;;  %p1450_p7 = scmp.lt.s32.totalorder %s1444_s0, %s1444_s0 }
  0x2f   :  { %p1451_p8 = por %p1450_p7, %p1449_p6 }
  0x31   :  { %p1452_p9 = pnand %p1451_p8, %p1445_p5 }
  0x33   :  { %1455 = shalt.err (!%p1452_p9)
}
  0x34   :  { %48 = dma.hbm_to_vmem [thread:$0]  %s1765_s2, 1024, %s43_s15, [#allocation6], %s1510_s27, %s1510_s27, %s1511_s28  }
  0x35   :  { %s1456_s5 = scalar_lea.hbm %s1766_s3, 2176 }
  0x36   :  { %p1457_p10 = scmp.ne.s32.totalorder %s1766_s3, %s1456_s5  ;;  %p1460_p11 = scmp.lt.u32.totalorder %s1456_s5, %s1766_s3 }
  0x38   :  { %p1462_p12 = pnand %p1460_p11, %p1457_p10 }
  0x3a   :  { %1465 = shalt.err (!%p1462_p12)
}
  0x3b   :  { %s1466_s10 = scalar_lea.vmem %s1581_s17, 2176  ;;  %p1471_p0 = scmp.lt.s32.totalorder %s1581_s17, %s1581_s17 }
  0x3c   :  { %p1467_p13 = scmp.ne.s32.totalorder %s1581_s17, %s1466_s10  ;;  %p1472_p1 = scmp.lt.s32.totalorder %s1466_s10, %s1466_s10 }
  0x3e   :  { %p1473_p2 = por %p1472_p1, %p1471_p0 }
  0x40   :  { %p1474_p3 = pnand %p1473_p2, %p1467_p13 }
  0x42   :  { %1477 = shalt.err (!%p1474_p3)
}
  0x43   :  { %60 = dma.hbm_to_vmem [thread:$0]  %s1766_s3, 2176, %s1581_s17, [#allocation9], %s1510_s27, %s1510_s27, %s1511_s28  }
  0x44   :  { %1500 = dma.done.wait [#allocation3], 256  }
  0x45   :  { %1501 = vsyncadd [#allocation3], 4294967040 }
  0x46   :  { %1502 = dma.done.wait [#allocation6], 2048  }
  0x47   :  { %1503 = vsyncadd [#allocation6], 4294965248 }
  0x48   :  { %1504 = dma.done.wait [#allocation9], 2176  }
  0x49   :  { %1505 = vsyncadd [#allocation9], 4294965120  ;;  %v1514_v0 = vmov 0.0|0.0   ;;  %vm1515_vm0 = vmmov 0   ;;  %v1516_v1 = vmov 0.0   ;;  %v1517_v2 = vmov 0  }
  0x4a   :  { %1305 = vmatprep.subr.bf16.mxu0 %v1514_v0  ;;  %1205 = vmatprep.mubr.msk.f32.mxu0 %vm1515_vm0, %v1516_v1  ;;  %v73_v3 = vld [vmem:[#allocation8] sm:$0xff]  ;;  %v74_v4 = vld [vmem:[#allocation8 + $0x8] sm:$0xff]  ;;  %v75_v5 = vld [vmem:[#allocation8 + $0x10] sm:$0xff]  ;;  %vm111_vm1 = vcmask 261120   ;;  %v90_v37 = vlaneseq  ;;  %vm446_vm4 = vcmask 130048   ;;  %s1518_s3 = smov [#allocation10]  }
  0x4b   :  { %1384 = vset.pattern.permute.xlu0 %v1517_v2  ;;  %1385 = vset.pattern.permute.xlu1 %v1517_v2  ;;  %v1621_v6 = vpack.c.bf16 %v74_v4, %v73_v3  ;;  %v76_v7 = vld [vmem:[#allocation8 + $0x18] sm:$0xff]  ;;  %v94_v8 = vld [vmem:[#allocation5] sm:$0xff]  ;;  %v1623_v9 = vld [vmem:[#allocation2] sm:$0xff]  ;;  %s1111_s12 = sshll.u32 %s1518_s3, 4  ;;  %s1112_s12 = int_to_ptr.vmem [resolvable:$true] %s1111_s12 }
  0x4c   :  { %v95_v10 = vld [vmem:[#allocation5 + $0x8] sm:$0xff]  ;;  %v1626_v11 = vpack.c.bf16 %v76_v7, %v75_v5  ;;  %v96_v12 = vld [vmem:[#allocation5 + $0x10] sm:$0xff]  ;;  %v98_v13 = vld [vmem:[#allocation7] sm:$0xff]  ;;  %v106_v25 = vadd.f32 %v1623_v9, %v1623_v9  ;;  %v91_v39 = vand.u32 127, %v90_v37  ;;  %v1678_v56 = vshrl.u32 %v90_v37, 7  ;;  %s1478_s1 = scalar_lea.vmem %s1112_s12, 256  ;;  %p1483_p5 = scmp.lt.s32.totalorder %s1112_s12, %s1112_s12 }
  0x4d   :  { %1307 = vmatpush3.bf16.msra.mxu0 %v1621_v6  ;;  %v99_v14 = vld [vmem:[#allocation7 + $0x8] sm:$0xff]  ;;  %v1319_v15 = vpack.c.bf16 %v95_v10, %v94_v8  ;;  %v97_v16 = vld [vmem:[#allocation5 + $0x18] sm:$0xff]  ;;  %v102_v17 = vadd.f32 %v98_v13, %v94_v8  ;;  %v100_v19 = vld [vmem:[#allocation7 + $0x10] sm:$0xff]  ;;  %p1479_p4 = scmp.ne.s32.totalorder %s1112_s12, %s1478_s1  ;;  %p1484_p6 = scmp.lt.s32.totalorder %s1478_s1, %s1478_s1 }
  0x4e   :  { %1308 = vmatprep.subr.bf16.mxu0 %v1514_v0  ;;  %v103_v18 = vadd.f32 %v99_v14, %v95_v10  ;;  %v101_v20 = vld [vmem:[#allocation7 + $0x18] sm:$0xff]  ;;  %v104_v21 = vadd.f32 %v100_v19, %v96_v12  ;;  %v1629_v23 = vld [vmem:[#allocation8 + $0x28] sm:$0xff]  ;;  %v1323_v29 = vpack.c.bf16 %v97_v16, %v96_v12  ;;  %v85_v31 = vld [vmem:[#allocation8 + $0x60] sm:$0xff]  ;;  %vm92_vm2 = vcmp.lt.s32.totalorder %v91_v39, 64 }
  0x4f   :  { %v105_v22 = vadd.f32 %v101_v20, %v97_v16  ;;  %v84_v24 = vld [vmem:[#allocation8 + $0x58] sm:$0xff]  ;;  %1216 = vmatprep.mubr.msk.f32.mxu1 %vm111_vm1, %v1629_v23  ;;  %v1636_v30 = vld [vmem:[#allocation8 + $0x48] sm:$0xff]  ;;  %v81_v32 = vld [vmem:[#allocation8 + $0x40] sm:$0xff]  ;;  %v109_v58 = vsub.s32 0, %v1678_v56  ;;  %p1485_p7 = por %p1484_p6, %p1483_p5 }
  0x50   :  { %v1311_v26 = vpack.c.bf16 %v103_v18, %v102_v17  ;;  %278 = vperm.xlu0 %1384, %v84_v24   ;;  %v80_v27 = vld [vmem:[#allocation8 + $0x38] sm:$0xff]  ;;  %v1641_v33 = vld [vmem:[#allocation8 + $0x30] sm:$0xff]  ;;  %vm1661_vm3 = vmpackc.low %vm92_vm2, %vm92_vm2 }
  0x51   :  { %1310 = vmatpush3.bf16.msra.mxu0 %v1626_v11  ;;  %v1315_v28 = vpack.c.bf16 %v105_v22, %v104_v21  ;;  %187 = vperm.xlu1 %1385, %v80_v27   ;;  %v1643_v34 = vld [vmem:[#allocation8 + $0x50] sm:$0xff]  ;;  %v86_v53 = vld [vmem:[#allocation8 + $0x68] sm:$0xff]  ;;  %v1680_v57 = vld [vmem:[#allocation8 + $0x80] sm:$0xff]  ;;  %p1486_p8 = pnand %p1485_p7, %p1479_p4 }
  0x52   :  { %1320 = vmatprep.subr.bf16.mxu0 %v1319_v15  ;;  %1312 = vmatprep.subr.bf16.mxu1 %v1311_v26  ;;  %v87_v54 = vld [vmem:[#allocation8 + $0x70] sm:$0xff]  ;;  %v1683_v59 = vld [vmem:[#allocation8 + $0x78] sm:$0xff]  ;;  %v1685_v60 = vld [vmem:[#allocation8 + $0x20] sm:$0xff] }
  0x53   :  { %1314 = vmatpush3.bf16.msra.mxu1 %v1311_v26  ;;  %v1675_v55 = vpack.c.bf16 %v87_v54, %v86_v53  ;;  %v1690_v3 = vrot.slane %v1685_v60, %v109_v58  ;;  %v626_v7 = vld [vmem:[#allocation5 + $0x20] sm:$0xff]  ;;  %v627_v8 = vld [vmem:[#allocation5 + $0x28] sm:$0xff]  ;;  %v1698_v10 = vld [vmem:[#allocation2 + $0x8] sm:$0xff]  ;;  %v614_v58 = vsub.s32 2, %v1678_v56 }
  0x54   :  { %1206 = vmatmul.mubr.msk.f32.vlgmr.msra.gmra.mrb[0].mxu0 %vm111_vm1, %v106_v25  ;;  %1316 = vmatprep.subr.bf16.mxu1 %v1315_v28  ;;  %v1353_v12 = vpack.c.bf16 %v627_v8, %v626_v7  ;;  %v628_v13 = vld [vmem:[#allocation5 + $0x30] sm:$0xff]  ;;  %v629_v14 = vld [vmem:[#allocation5 + $0x38] sm:$0xff] }
  0x55   :  { %1322 = vmatpush3.bf16.msra.mxu0 %v1319_v15  ;;  %1227 = vmatprep.mubr.msk.f32.mxu0 %vm111_vm1, %v1636_v30  ;;  %v639_v15 = vadd.f32 %v1698_v10, %v1698_v10  ;;  %v1357_v16 = vpack.c.bf16 %v629_v14, %v628_v13  ;;  %v633_v20 = vld [vmem:[#allocation7 + $0x30] sm:$0xff]  ;;  %v634_v21 = vld [vmem:[#allocation7 + $0x38] sm:$0xff] }
  0x56   :  { %1324 = vmatprep.subr.bf16.mxu0 %v1323_v29  ;;  %283 = vperm.xlu0 %1384, %v85_v31   ;;  %v637_v22 = vadd.f32 %v633_v20, %v628_v13  ;;  %v638_v24 = vadd.f32 %v634_v21, %v629_v14 }
  0x57   :  { %1318 = vmatpush3.bf16.msra.mxu1 %v1315_v28  ;;  %192 = vperm.xlu1 %1385, %v81_v32  }
  0x58   :  { %v1349_v25 = vpack.c.bf16 %v638_v24, %v637_v22 }
  0x59   :  { %1326 = vmatpush3.bf16.msra.mxu0 %v1323_v29 }
  0x5a   :  { %1217 = vmatmul.mubr.msk.f32.vlgmr.msra.gmra.mrb[0].mxu1 %vm111_vm1, %v1641_v33  ;;  %1333 = vmatprep.subr.bf16.mxu0 %v1514_v0 }
  0x5c   :  { %1228 = vmatmul.mubr.msk.f32.vlgmr.msra.gmra.mrb[2].mxu0 %vm111_vm1, %v1643_v34 }
  0x5d   :  { %1241 = vmatprep.mubr.msk.f32.mxu0 %vm1515_vm0, %v1516_v1 }
  0xcf   :  { %v1652_v38 = vpop.permute.xlu0 %278 }
  0xd0   :  { %v1654_v41 = vpop.permute.xlu1 %187 }
  0xd5   :  { %v1656_v43 = vpop.permute.xlu0 %283 }
  0xd6   :  { %v1670_v51 = vpop.permute.xlu1 %192 }
 0x127   :  { %v181_v35 = vpop.f32.mrb[0].mxu0 }
 0x128   :  { %v1207_v36 = vpop.f32.mrb[1].mxu0  ;;  %v182_v5 = vadd.f32 %v181_v35, %v1690_v3 }
 0x12d   :  { %v1218_v40 = vpop.f32.mrb[0].mxu1 }
 0x12e   :  { %v267_v42 = vpop.f32.mrb[1].mxu1  ;;  %v273_v52 = vadd.f32 %v1218_v40, %v1670_v51 }
 0x12f   :  { %v1229_v44 = vpop.f32.mrb[2].mxu0  ;;  %v268_v45 = vadd.f32 %v267_v42, %v1654_v41 }
 0x130   :  { %v364_v46 = vadd.f32 %v1229_v44, %v1656_v43  ;;  %v358_v47 = vpop.f32.mrb[3].mxu0 }
 0x131   :  { %v359_v48 = vadd.f32 %v358_v47, %v1652_v38  ;;  %1234 = vmatprep.mubr.f32.mxu1 %v268_v45 }
 0x133   :  { %v1327_v50 = vpack.c.bf16 %v364_v46, %v359_v48 }
 0x135   :  { %1329 = vmatprep.subr.msk.bf16.mxu1 %vm1661_vm3, %v1327_v50 }
 0x136   :  { %1332 = vmatpush3.bf16.xpose.msk.msra.mxu1 %vm1661_vm3, %v1327_v50 }
 0x137   :  { %1336 = vmatprep.subr.bf16.mxu1 %v1514_v0 }
 0x13d   :  { %1235 = vmatmul.mubr.f32.vlgmr.msra.gmra.mrb[2].mxu1 %v273_v52 }
 0x13e   :  { %1248 = vmatprep.mubr.msk.f32.mxu1 %vm1515_vm0, %v1516_v1  ;;  %1338 = vmatpush3.bf16.msra.mxu1 %v1675_v55 }
 0x210   :  { %v1236_v61 = vpop.f32.mrb[2].mxu1 }
 0x211   :  { %v445_v62 = vmul.f32 %v1236_v61, %v1680_v57  ;;  %v435_v63 = vpop.f32.mrb[3].mxu1  ;;  %v619_v61 = vsub.s32 3, %v1678_v56 }
 0x212   :  { %v444_v2 = vmul.f32 %v435_v63, %v1683_v59 }
 0x214   :  { %v1334_v4 = vpack.c.bf16 %v445_v62, %v444_v2  ;;  %v615_v62 = vrot.slane %v1685_v60, %v614_v58 }
 0x216   :  { %1335 = vmatpush3.bf16.msra.mxu0 %v1334_v4 }
 0x217   :  { %1339 = vmatprep.subr.bf16.mxu0 %v1514_v0 }
 0x219   :  { %1242 = vmatmul.mubr.msk.f32.vlgmr.msra.gmra.mrb[4].mxu0 %vm446_vm4, %v182_v5 }
 0x21a   :  { %1341 = vmatpush3.bf16.msra.mxu0 %v1621_v6  ;;  %1259 = vmatprep.mubr.msk.f32.mxu0 %vm1515_vm0, %v1516_v1  ;;  %v631_v6 = vld [vmem:[#allocation7 + $0x20] sm:$0xff] }
 0x21b   :  { %1342 = vmatprep.subr.bf16.mxu0 %v1514_v0  ;;  %v635_v17 = vadd.f32 %v631_v6, %v626_v7 }
 0x21e   :  { %1344 = vmatpush3.bf16.msra.mxu0 %v1626_v11  ;;  %v632_v11 = vld [vmem:[#allocation7 + $0x28] sm:$0xff] }
 0x21f   :  { %1354 = vmatprep.subr.bf16.mxu0 %v1353_v12  ;;  %v636_v18 = vadd.f32 %v632_v11, %v627_v8 }
 0x221   :  { %1260 = vmatmul.mubr.msk.f32.vlgmr.msra.gmra.mrb[6].mxu0 %vm111_vm1, %v639_v15  ;;  %v1345_v19 = vpack.c.bf16 %v636_v18, %v635_v17 }
 0x222   :  { %1356 = vmatpush3.bf16.msra.mxu0 %v1353_v12  ;;  %1281 = vmatprep.mubr.msk.f32.mxu0 %vm111_vm1, %v1636_v30 }
 0x223   :  { %1358 = vmatprep.subr.bf16.mxu0 %v1357_v16  ;;  %1346 = vmatprep.subr.bf16.mxu1 %v1345_v19 }
 0x226   :  { %1360 = vmatpush3.bf16.msra.mxu0 %v1357_v16 }
 0x227   :  { %1367 = vmatprep.subr.bf16.mxu0 %v1514_v0 }
 0x229   :  { %1282 = vmatmul.mubr.msk.f32.vlgmr.msra.gmra.mrb[8].mxu0 %vm111_vm1, %v1643_v34 }
 0x22a   :  { %1295 = vmatprep.mubr.msk.f32.mxu0 %vm1515_vm0, %v1516_v1 }
 0x2ec   :  { %v516_v26 = vpop.f32.mrb[4].mxu0 }
 0x2ed   :  { %v1243_v27 = vpop.f32.mrb[5].mxu0  ;;  %1249 = vmatmul.mubr.msk.f32.vlgmr.msra.gmra.mrb[4].mxu1 %vm446_vm4, %v516_v26 }
 0x2ee   :  { %1348 = vmatpush3.bf16.msra.mxu1 %v1345_v19  ;;  %1270 = vmatprep.mubr.msk.f32.mxu1 %vm111_vm1, %v1629_v23  ;;  %v522_v23 = vsub.s32 1, %v1678_v56 }
 0x2ef   :  { %1350 = vmatprep.subr.bf16.mxu1 %v1349_v25 }
 0x2f2   :  { %1352 = vmatpush3.bf16.msra.mxu1 %v1349_v25 }
 0x2f4   :  { %v709_v28 = vpop.f32.mrb[6].mxu0 }
 0x2f5   :  { %1271 = vmatmul.mubr.msk.f32.vlgmr.msra.gmra.mrb[6].mxu1 %vm111_vm1, %v1641_v33  ;;  %v1261_v29 = vpop.f32.mrb[7].mxu0  ;;  %v523_v33 = vrot.slane %v1685_v60, %v522_v23  ;;  %v710_v53 = vadd.f32 %v709_v28, %v1690_v3 }
 0x2fc   :  { %v1283_v30 = vpop.f32.mrb[8].mxu0 }
 0x2fd   :  { %v860_v31 = vadd.f32 %v1283_v30, %v1656_v43  ;;  %v854_v32 = vpop.f32.mrb[9].mxu0 }
 0x2fe   :  { %v855_v34 = vadd.f32 %v854_v32, %v1652_v38 }
 0x300   :  { %v1361_v35 = vpack.c.bf16 %v860_v31, %v855_v34 }
 0x302   :  { %1363 = vmatprep.subr.msk.bf16.mxu1 %vm1661_vm3, %v1361_v35 }
 0x303   :  { %1366 = vmatpush3.bf16.xpose.msk.msra.mxu1 %vm1661_vm3, %v1361_v35 }
 0x304   :  { %1370 = vmatprep.subr.bf16.mxu1 %v1514_v0 }
 0x3c0   :  { %v593_v36 = vpop.f32.mrb[4].mxu1 }
 0x3c1   :  { %v594_v37 = vadd.f32 %v593_v36, %v523_v33  ;;  %v1250_v39 = vpop.f32.mrb[5].mxu1 }
 0x3c3   :  { %v597_v40 = vadd.f32 %v594_v37, %v1623_v9 }
 0x3c5   :  { %v598_v38 = vsel %vm111_vm1, %v597_v40, 0.0 }
 0x3c6   :  { %599 = vadd.xlane.f32.xlu0 %v598_v38 }
 0x3c8   :  { %v1272_v42 = vpop.f32.mrb[6].mxu1 }
 0x3c9   :  { %v779_v43 = vpop.f32.mrb[7].mxu1  ;;  %v785_v45 = vadd.f32 %v1272_v42, %v1670_v51 }
 0x3ca   :  { %v780_v44 = vadd.f32 %v779_v43, %v1654_v41 }
 0x3cc   :  { %1288 = vmatprep.mubr.f32.mxu1 %v780_v44 }
 0x3cd   :  { %1289 = vmatmul.mubr.f32.vlgmr.msra.gmra.mrb[8].mxu1 %v785_v45 }
 0x3ce   :  { %1372 = vmatpush3.bf16.msra.mxu1 %v1675_v55  ;;  %1302 = vmatprep.mubr.msk.f32.mxu1 %vm1515_vm0, %v1516_v1 }
 0x453   :  { %v600_v0 = vpop.xlane.xlu0 %599 }
 0x454   :  { %v602_v46 = vmul.f32 0.03125, %v600_v0 }
 0x456   :  { %v603_v47 = vsub.f32 %v597_v40, %v602_v46 }
 0x458   :  { %v604_v9 = vmul.f32 %v603_v47, %v603_v47 }
 0x45a   :  { %v605_v48 = vsel %vm111_vm1, %v604_v9, 0.0 }
 0x45b   :  { %606 = vadd.xlane.f32.xlu0 %v605_v48 }
 0x4a0   :  { %v1290_v49 = vpop.f32.mrb[8].mxu1 }
 0x4a1   :  { %v941_v50 = vmul.f32 %v1290_v49, %v1680_v57  ;;  %v931_v41 = vpop.f32.mrb[9].mxu1 }
 0x4a2   :  { %v940_v51 = vmul.f32 %v931_v41, %v1683_v59  ;;  %v620_v59 = vrot.slane %v1685_v60, %v619_v61 }
 0x4a4   :  { %v1368_v52 = vpack.c.bf16 %v941_v50, %v940_v51 }
 0x4a6   :  { %1369 = vmatpush3.bf16.msra.mxu0 %v1368_v52 }
 0x4a9   :  { %1296 = vmatmul.mubr.msk.f32.vlgmr.msra.gmra.mrb[10].mxu0 %vm446_vm4, %v710_v53 }
 0x4e8   :  { %v607_v1 = vpop.xlane.xlu0 %606 }
 0x4e9   :  { %v608_v54 = vmul.f32 0.03125, %v607_v1 }
 0x4eb   :  { %v609_v55 = vadd.f32 1e-05, %v608_v54 }
 0x4ed   :  { %1386 = vrsqrt.f32 %v609_v55 }
 0x4f7   :  { %v1387_v57 = vpop.eup %1386 }
 0x4f8   :  { %v611_v63 = vmul.f32 %v1387_v57, %v603_v47 }
 0x4fa   :  { %v616_v2 = vmul.f32 %v615_v62, %v611_v63 }
 0x4fc   :  { %v621_v4 = vadd.f32 %v620_v59, %v616_v2 }
 0x4fe   :  { %622 = vst.msk [vmem:[#allocation10] sm:$0xff] %vm111_vm1, %v621_v4 }
 0x57c   :  { %v1011_v3 = vpop.f32.mrb[10].mxu0 }
 0x57d   :  { %v1297_v5 = vpop.f32.mrb[11].mxu0  ;;  %1303 = vmatmul.mubr.msk.f32.vlgmr.msra.gmra.mrb[10].mxu1 %vm446_vm4, %v1011_v3 }
 0x650   :  { %v1084_v7 = vpop.f32.mrb[10].mxu1 }
 0x651   :  { %v1085_v8 = vadd.f32 %v1084_v7, %v523_v33  ;;  %v1304_v12 = vpop.f32.mrb[11].mxu1 }
 0x653   :  { %v1088_v13 = vadd.f32 %v1085_v8, %v1698_v10 }
 0x655   :  { %v1089_v56 = vsel %vm111_vm1, %v1088_v13, 0.0 }
 0x656   :  { %1090 = vadd.xlane.f32.xlu1 %v1089_v56 }
 0x6e3   :  { %v1091_v14 = vpop.xlane.xlu1 %1090 }
 0x6e4   :  { %v1092_v15 = vmul.f32 0.03125, %v1091_v14 }
 0x6e6   :  { %v1093_v16 = vsub.f32 %v1088_v13, %v1092_v15 }
 0x6e8   :  { %v1094_v60 = vmul.f32 %v1093_v16, %v1093_v16 }
 0x6ea   :  { %v1095_v6 = vsel %vm111_vm1, %v1094_v60, 0.0 }
 0x6eb   :  { %1096 = vadd.xlane.f32.xlu0 %v1095_v6 }
 0x778   :  { %v1097_v11 = vpop.xlane.xlu0 %1096 }
 0x779   :  { %v1098_v17 = vmul.f32 0.03125, %v1097_v11 }
 0x77b   :  { %v1099_v18 = vadd.f32 1e-05, %v1098_v17 }
 0x77d   :  { %1388 = vrsqrt.f32 %v1099_v18 }
 0x787   :  { %v1389_v19 = vpop.eup %1388 }
 0x788   :  { %v1101_v20 = vmul.f32 %v1389_v19, %v1093_v16 }
 0x78a   :  { %v1102_v21 = vmul.f32 %v1101_v20, %v615_v62 }
 0x78c   :  { %v1103_v10 = vadd.f32 %v1102_v21, %v620_v59 }
 0x78e   :  { %1105 = vst.msk [vmem:[#allocation10 + $0x8] sm:$0xff] %vm111_vm1, %v1103_v10 }
 0x78f   :  { %1489 = shalt.err (!%p1486_p8)
}
 0x790   :  { %s1490_s15 = scalar_lea.hbm %s1767_s4, 256 }
 0x791   :  { %p1491_p9 = scmp.ne.s32.totalorder %s1767_s4, %s1490_s15  ;;  %p1494_p10 = scmp.lt.u32.totalorder %s1490_s15, %s1767_s4 }
 0x793   :  { %p1496_p11 = pnand %p1494_p10, %p1491_p9 }
 0x795   :  { %1499 = shalt.err (!%p1496_p11)
}
 0x796   :  { %1117 = dma.vmem_to_hbm [thread:$0]  %s1112_s12, 256, %s1767_s4, [#allocation4], %s1510_s27, %s1510_s27, %s1511_s28  }
 0x797   :  { %1506 = dma.done.wait [#allocation4], 256  }
 0x798   :  { %1507 = vsyncadd [#allocation4], 4294967040 }
 0x799   :  { %1121 = vsyncpa [#allocation3], 1 }
 0x79a   :  { %1122 = vsyncpa [#allocation6], 1 }
 0x79b   :  { %1123 = vsyncpa [#allocation9], 1 }
 0x79c   :  { %1124 = vsyncpa [#allocation4], 1 }

</bundles_post_ra>
